<compile_context>
chip_gen: v6e
topology: v6e:2x2x1
jax: 0.10.0
libtpu: 0.0.40
codegen_flags: <defaults>
</compile_context>

<pallas_src>
import math
from typing import Tuple

import jax
import jax.numpy as jnp
from jax.experimental import pallas as pl
from jax.experimental.pallas import tpu as pltpu

LANE = 128
SUBLANE = 8


def _round_up(x: int, m: int) -> int:
    return (x + m - 1) // m * m


# ----------------------------- Pallas kernel --------------------------------
def make_qnetwork_kernel(cfg):
    """Builds the kernel closed over the static packed-parameter layout."""
    dp, lp, offs = cfg["dp"], cfg["lp"], cfg["offs"]
    ow1, ob1 = offs["w1"], offs["b1"]
    ow2, ob2 = offs["w2"], offs["b2"]
    owo, obo = offs["wo"], offs["bo"]

    def kernel(x_ref, p_ref, out_ref):
        # x_ref:   (TB, dp)     batch tile of the (feature-padded) state
        # p_ref:   (rows, lp)   packed [W1 | b1 | W2 | b2 | Wo | bo], lane-dense
        # out_ref: (TB, lp)     fused, lane-padded head output
        x = x_ref[...]
        # hidden layer 1: tanh(x @ W1 + b1)
        h = jnp.tanh(
            jnp.dot(x, p_ref[ow1:ow1 + dp, :],
                    preferred_element_type=jnp.float32)
            + p_ref[ob1:ob1 + 1, :])
        # hidden layer 2: tanh(h @ W2 + b2)
        h = jnp.tanh(
            jnp.dot(h, p_ref[ow2:ow2 + lp, :],
                    preferred_element_type=jnp.float32)
            + p_ref[ob2:ob2 + 1, :])
        # fused output heads: h @ [Wo_0 | Wo_1 | ... | 0-pad] + [bo_0 | ... | 0]
        out_ref[...] = (
            jnp.dot(h, p_ref[owo:owo + lp, :],
                    preferred_element_type=jnp.float32)
            + p_ref[obo:obo + 1, :])

    return kernel


# --------------------------- parameter packing -------------------------------
def pack_qnetwork_params(params, dim_state: int):
    """Zero-pads all weights/biases to 128 lanes and packs them into one buffer."""
    w1, b1, w2, b2, wo, bo = [jnp.asarray(p, jnp.float32) for p in params]
    h1, h2, total_actions = w1.shape[1], w2.shape[1], wo.shape[1]

    dp = _round_up(dim_state, SUBLANE)
    lp = max(_round_up(h1, LANE), _round_up(h2, LANE),
             _round_up(total_actions, LANE))

    def pad_w(m, rows, cols):
        return jnp.pad(m, ((0, rows - m.shape[0]), (0, cols - m.shape[1])))

    def pad_b(b, cols):
        b = b.reshape(1, -1)
        return jnp.pad(b, ((0, SUBLANE - 1), (0, cols - b.shape[1])))

    blocks = [
        pad_w(w1, dp, lp), pad_b(b1, lp),
        pad_w(w2, lp, lp), pad_b(b2, lp),
        pad_w(wo, lp, lp), pad_b(bo, lp),
    ]
    packed = jnp.concatenate(blocks, axis=0)

    offs, r = {}, 0
    offs["w1"] = r; r += dp
    offs["b1"] = r; r += SUBLANE
    offs["w2"] = r; r += lp
    offs["b2"] = r; r += SUBLANE
    offs["wo"] = r; r += lp
    offs["bo"] = r; r += SUBLANE

    cfg = dict(dp=dp, lp=lp, rows=r, dim_state=dim_state,
               total_actions=int(total_actions), offs=offs)
    return packed, cfg


# ------------------------------ JAX wrapper ----------------------------------
def qnetwork_forward(state, packed, cfg, dims_action: Tuple[int, ...],
                     *, tile_batch: int = 512):
    """Runs the Pallas kernel; returns the per-device output list."""
    state = jnp.asarray(state, jnp.float32)
    batch, ds = state.shape
    dp, lp, rows = cfg["dp"], cfg["lp"], cfg["rows"]

    # Pad features to the sublane-aligned width baked into the packed params.
    if ds < dp:
        state = jnp.pad(state, ((0, 0), (0, dp - ds)))

    # Batch tiling: big tiles for training-size batches, clamp for tiny ones.
    tb = _round_up(min(tile_batch, _round_up(batch, SUBLANE)), SUBLANE)
    batch_pad = _round_up(batch, tb)
    if batch_pad > batch:
        state = jnp.pad(state, ((0, batch_pad - batch), (0, 0)))
    grid = (batch_pad // tb,)

    fused = pl.pallas_call(
        make_qnetwork_kernel(cfg),
        out_shape=jax.ShapeDtypeStruct((batch_pad, lp), jnp.float32),
        grid=grid,
        in_specs=[
            # streamed batch tile of the state
            pl.BlockSpec((tb, dp), lambda i: (i, 0)),
            # packed weights: constant index_map -> stays VMEM-resident
            pl.BlockSpec((rows, lp), lambda i: (0, 0)),
        ],
        out_specs=pl.BlockSpec((tb, lp), lambda i: (i, 0)),
        compiler_params=pltpu.CompilerParams(
            dimension_semantics=("parallel",)),  # megacore on v7x
    )(state, packed)

    # Glue: drop batch/lane padding and split into the per-device list, like
    # the PyTorch module returns `[output0(x), output1(x), ...]`.
    fused = fused[:batch]
    outputs, offset = [], 0
    for dim_a in dims_action:
        outputs.append(fused[:, offset:offset + dim_a])
        offset += dim_a
    return outputs


# --------------------------- parameter creation -------------------------------
def xavier_uniform(key, fan_in, fan_out):
    limit = math.sqrt(6.0 / (fan_in + fan_out))
    return jax.random.uniform(key, (fan_in, fan_out), jnp.float32,
                              minval=-limit, maxval=limit)


def init_qnetwork_params(key, dim_state: int, dims_action: Tuple[int, ...],
                         dims_hidden_neurons: Tuple[int, ...] = (64, 64)):
    assert len(dims_hidden_neurons) == 2, "kernel written for 2 hidden layers"
    h1, h2 = dims_hidden_neurons
    k1, k2, *kheads = jax.random.split(key, 2 + len(dims_action))

    w1 = xavier_uniform(k1, dim_state, h1)          # [dim_state, h1]
    b1 = jnp.zeros((h1,), jnp.float32)
    w2 = xavier_uniform(k2, h1, h2)                 # [h1, h2]
    b2 = jnp.zeros((h2,), jnp.float32)
    # Per-head weights fused along the output axis.
    wo = jnp.concatenate(
        [xavier_uniform(kh, h2, d) for kh, d in zip(kheads, dims_action)],
        axis=1)                                     # [h2, sum(dims_action)]
    bo = jnp.zeros((int(sum(dims_action)),), jnp.float32)
    return (w1, b1, w2, b2, wo, bo)


# ------------------------------- reference -----------------------------------
def qnetwork_ref(state, params, dims_action):
    w1, b1, w2, b2, wo, bo = params
    h = jnp.tanh(state @ w1 + b1)
    h = jnp.tanh(h @ w2 + b2)
    fused = h @ wo + bo
    outs, off = [], 0
    for d in dims_action:
        outs.append(fused[:, off:off + d])
        off += d
    return outs


# --------------------------------- main ---------------------------------------
if __name__ == "__main__":
    dim_state = 16
    dims_hidden_neurons = (64, 64)
    dims_action = (4, 6)          # two "devices" / output heads
    batch = 8

    key = jax.random.PRNGKey(0)
    key_params, key_state, key_state2 = jax.random.split(key, 3)

    params = init_qnetwork_params(key_params, dim_state, dims_action,
                                  dims_hidden_neurons)
    packed, cfg = pack_qnetwork_params(params, dim_state)

    # --- test 1: small batch, single grid step --------------------------------
    state = jax.random.normal(key_state, (batch, dim_state), jnp.float32)
    outputs = qnetwork_forward(state, packed, cfg, dims_action)
    outputs = [jax.block_until_ready(o) for o in outputs]
    refs = qnetwork_ref(state, params, dims_action)
    for o, r, dim_a in zip(outputs, refs, dims_action):
        assert o.shape == (batch, dim_a), (o.shape, (batch, dim_a))
        assert jnp.allclose(o, r, atol=1e-5, rtol=1e-5), "mismatch vs reference"

    # --- test 2: non-aligned batch exercising the batch grid + padding --------
    batch2 = 20
    state2 = jax.random.normal(key_state2, (batch2, dim_state), jnp.float32)
    outputs2 = qnetwork_forward(state2, packed, cfg, dims_action, tile_batch=8)
    outputs2 = [jax.block_until_ready(o) for o in outputs2]
    refs2 = qnetwork_ref(state2, params, dims_action)
    for o, r, dim_a in zip(outputs2, refs2, dims_action):
        assert o.shape == (batch2, dim_a), (o.shape, (batch2, dim_a))
        assert jnp.allclose(o, r, atol=1e-5, rtol=1e-5), "mismatch vs reference"

    print("KERNEL_OK")
</pallas_src>

<mosaic_0001>
module attributes {stable_mosaic.version = 11 : i64} {
  func.func @kernel(%arg0: i32, %arg1: memref<8x16xf32, #tpu.memory_space<vmem>>, %arg2: memref<296x128xf32, #tpu.memory_space<vmem>>, %arg3: memref<8x128xf32, #tpu.memory_space<vmem>>) attributes {dimension_semantics = [#tpu.dimension_semantics<parallel>], iteration_bounds = array<i64: 1>, scalar_prefetch = 0 : i64, scratch_operands = 0 : i64, tpu.core_type = #tpu.core_type<tc>, window_params = [{transform_indices = @transform_0, window_bounds = array<i64: 8, 16>}, {pipeline_mode = #tpu.pipeline_mode<synchronous>, transform_indices = @transform_1, window_bounds = array<i64: 296, 128>}, {transform_indices = @transform_2, window_bounds = array<i64: 8, 128>}]} {
    %c0 = arith.constant 0 : index
    %c0_0 = arith.constant 0 : index
    %0 = vector.load %arg1[%c0, %c0_0] : memref<8x16xf32, #tpu.memory_space<vmem>>, vector<8x16xf32>
    %c0_1 = arith.constant 0 : index
    %c0_2 = arith.constant 0 : index
    %1 = vector.load %arg2[%c0_1, %c0_2] : memref<296x128xf32, #tpu.memory_space<vmem>>, vector<16x128xf32>
    %cst = arith.constant dense<0.000000e+00> : vector<8x128xf32>
    %2 = tpu.matmul %0, %1, %cst {dimension_numbers = #tpu.dot_dimension_numbers<[1], [0], [0], [1], [0, 0, 1, 1], [], []>} : vector<8x16xf32>, vector<16x128xf32>, vector<8x128xf32> -> vector<8x128xf32>
    %c16 = arith.constant 16 : index
    %c0_3 = arith.constant 0 : index
    %3 = vector.load %arg2[%c16, %c0_3] : memref<296x128xf32, #tpu.memory_space<vmem>>, vector<1x128xf32>
    %4 = vector.broadcast %3 : vector<1x128xf32> to vector<8x128xf32>
    %5 = arith.addf %2, %4 : vector<8x128xf32>
    %6 = math.tanh %5 : vector<8x128xf32>
    %c24 = arith.constant 24 : index
    %c0_4 = arith.constant 0 : index
    %7 = vector.load %arg2[%c24, %c0_4] : memref<296x128xf32, #tpu.memory_space<vmem>>, vector<128x128xf32>
    %cst_5 = arith.constant dense<0.000000e+00> : vector<8x128xf32>
    %8 = tpu.matmul %6, %7, %cst_5 {dimension_numbers = #tpu.dot_dimension_numbers<[1], [0], [0], [1], [0, 0, 1, 1], [], []>} : vector<8x128xf32>, vector<128x128xf32>, vector<8x128xf32> -> vector<8x128xf32>
    %c152 = arith.constant 152 : index
    %c0_6 = arith.constant 0 : index
    %9 = vector.load %arg2[%c152, %c0_6] : memref<296x128xf32, #tpu.memory_space<vmem>>, vector<1x128xf32>
    %10 = vector.broadcast %9 : vector<1x128xf32> to vector<8x128xf32>
    %11 = arith.addf %8, %10 : vector<8x128xf32>
    %12 = math.tanh %11 : vector<8x128xf32>
    %c160 = arith.constant 160 : index
    %c0_7 = arith.constant 0 : index
    %13 = vector.load %arg2[%c160, %c0_7] : memref<296x128xf32, #tpu.memory_space<vmem>>, vector<128x128xf32>
    %cst_8 = arith.constant dense<0.000000e+00> : vector<8x128xf32>
    %14 = tpu.matmul %12, %13, %cst_8 {dimension_numbers = #tpu.dot_dimension_numbers<[1], [0], [0], [1], [0, 0, 1, 1], [], []>} : vector<8x128xf32>, vector<128x128xf32>, vector<8x128xf32> -> vector<8x128xf32>
    %c288 = arith.constant 288 : index
    %c0_9 = arith.constant 0 : index
    %15 = vector.load %arg2[%c288, %c0_9] : memref<296x128xf32, #tpu.memory_space<vmem>>, vector<1x128xf32>
    %16 = vector.broadcast %15 : vector<1x128xf32> to vector<8x128xf32>
    %17 = arith.addf %14, %16 : vector<8x128xf32>
    %c0_10 = arith.constant 0 : index
    %c0_11 = arith.constant 0 : index
    %18 = vector.load %arg3[%c0_10, %c0_11] : memref<8x128xf32, #tpu.memory_space<vmem>>, vector<8x128xf32>
    tpu.vector_store %arg3[%c0_10, %c0_11], %17 {strides = array<i32>} : memref<8x128xf32, #tpu.memory_space<vmem>>, vector<8x128xf32>,
    return
  }
  func.func @transform_0(%arg0: i32) -> (i32, i32) {
    %c0_i32 = arith.constant 0 : i32
    %c0_i32_0 = arith.constant 0 : i32
    return %arg0, %c0_i32 : i32, i32
  }
  func.func @transform_1(%arg0: i32) -> (i32, i32) {
    %c0_i32 = arith.constant 0 : i32
    %c0_i32_0 = arith.constant 0 : i32
    %c0_i32_1 = arith.constant 0 : i32
    return %c0_i32, %c0_i32_0 : i32, i32
  }
  func.func @transform_2(%arg0: i32) -> (i32, i32) {
    %c0_i32 = arith.constant 0 : i32
    %c0_i32_0 = arith.constant 0 : i32
    return %arg0, %c0_i32 : i32, i32
  }
}

</mosaic_0001>

<bundles_post_ra>
// kernel: tpu_custom_call.1
= control target key start
LH: loop header
LB: loop body
LE: loop exit
PB: predicated region body
PF: predicated region fallthrough
CT: control target
= control target key end

     0   :  { %7 = vsyncpa [#allocation3], 0  ;;  %s587_s0 = inlined_call_operand.hbm [shape: f32[8,16], index: 0, kind: input, shape index: {}]   ;;  %s588_s1 = inlined_call_operand.hbm [shape: f32[296,128], index: 1, kind: input, shape index: {}]   ;;  %s589_s2 = inlined_call_operand.hbm [shape: f32[8,128], index: 2, kind: output, shape index: {}]  }
   0x1   :  { %8 = vsyncpa [#allocation6], 0 }
   0x2   :  { %9 = vsyncpa [#allocation4], 0  ;;  %s516_s9 = smov [#allocation2]   ;;  %s517_s11 = smov [#allocation5]  }
   0x3   :  { %s16_s10 = sshll.u32 %s516_s9, 4  ;;  %s25_s12 = sshll.u32 %s517_s11, 4  ;;  %s17_s10 = int_to_ptr.vmem [resolvable:$true] %s16_s10  ;;  %s26_s12 = int_to_ptr.vmem [resolvable:$true] %s25_s12 }
   0x4   :  { %s458_s13 = scalar_lea.vmem %s17_s10, 128  ;;  %p463_p1 = scmp.lt.s32.totalorder %s17_s10, %s17_s10 }
   0x5   :  { %p459_p0 = scmp.ne.s32.totalorder %s17_s10, %s458_s13  ;;  %p464_p2 = scmp.lt.s32.totalorder %s458_s13, %s458_s13 }
   0x7   :  { %p465_p3 = por %p464_p2, %p463_p1 }
   0x9   :  { %p466_p4 = pnand %p465_p3, %p459_p0 }
   0xb   :  { %469 = shalt.err (!%p466_p4)
}
   0xc   :  { %19 = dma.hbm_to_vmem [thread:$0]  %s587_s0, 128, %s17_s10, [#allocation3]  }
   0xd   :  { %s478_s16 = scalar_lea.vmem %s26_s12, 4736  ;;  %p483_p6 = scmp.lt.s32.totalorder %s26_s12, %s26_s12 }
   0xe   :  { %p479_p5 = scmp.ne.s32.totalorder %s26_s12, %s478_s16  ;;  %p484_p7 = scmp.lt.s32.totalorder %s478_s16, %s478_s16 }
  0x10   :  { %p485_p8 = por %p484_p7, %p483_p6 }
  0x12   :  { %p486_p9 = pnand %p485_p8, %p479_p5 }
  0x14   :  { %489 = shalt.err (!%p486_p9)
}
  0x15   :  { %s518_s17 = smov 128   ;;  %s519_s18 = smov 8  }
  0x16   :  { %31 = dma.hbm_to_vmem [thread:$0]  %s588_s1, 4736, %s26_s12, [#allocation6], %s518_s17, %s518_s17, %s519_s18  }
  0x17   :  { %510 = dma.done.wait [#allocation3], 128  }
  0x18   :  { %511 = vsyncadd [#allocation3], 4294967168 }
  0x19   :  { %512 = dma.done.wait [#allocation6], 4736  }
  0x1a   :  { %513 = vsyncadd [#allocation6], 4294962560  ;;  %v520_v0 = vmov 0.0   ;;  %vm521_vm0 = vmmov 0   ;;  %v40_v1 = vld [vmem:[#allocation5 + $0x8] sm:$0xff]  ;;  %v39_v2 = vld [vmem:[#allocation5] sm:$0xff] }
  0x1b   :  { %362 = vmatprep.subr.mxu0 %v520_v0  ;;  %366 = vmatprep.mubr.msk.f32.mxu0 %vm521_vm0, %v520_v0  ;;  %v38_v3 = vld [vmem:[#allocation2] sm:$0xff]  ;;  %vm46_vm1 = vcmask 130048   ;;  %v136_v4 = vld [vmem:[#allocation5 + $0x90] sm:$0xff]  ;;  %v135_v5 = vld [vmem:[#allocation5 + $0x88] sm:$0xff]  ;;  %s522_s0 = smov [#allocation7]  }
  0x1c   :  { %369 = vmatprep.subr.mxu1 %v520_v0  ;;  %401 = vmatprep.mubr.msk.f32.mxu1 %vm521_vm0, %v520_v0  ;;  %v134_v6 = vld [vmem:[#allocation5 + $0x80] sm:$0xff]  ;;  %v133_v7 = vld [vmem:[#allocation5 + $0x78] sm:$0xff]  ;;  %v132_v8 = vld [vmem:[#allocation5 + $0x70] sm:$0xff]  ;;  %s311_s1 = sshll.u32 %s522_s0, 4  ;;  %s312_s1 = int_to_ptr.vmem [resolvable:$true] %s311_s1 }
  0x1d   :  { %363 = vmatpush3.msra.mxu0 %v40_v1  ;;  %370 = vmatpush3.msra.mxu1 %v136_v4  ;;  %v131_v9 = vld [vmem:[#allocation5 + $0x68] sm:$0xff]  ;;  %v130_v10 = vld [vmem:[#allocation5 + $0x60] sm:$0xff]  ;;  %v129_v11 = vld [vmem:[#allocation5 + $0x58] sm:$0xff]  ;;  %s490_s21 = scalar_lea.vmem %s312_s1, 128  ;;  %p495_p11 = scmp.lt.s32.totalorder %s312_s1, %s312_s1 }
  0x1e   :  { %364 = vmatprep.subr.mxu0 %v520_v0  ;;  %371 = vmatprep.subr.mxu1 %v520_v0  ;;  %v128_v12 = vld [vmem:[#allocation5 + $0x50] sm:$0xff]  ;;  %v127_v13 = vld [vmem:[#allocation5 + $0x48] sm:$0xff]  ;;  %v126_v14 = vld [vmem:[#allocation5 + $0x40] sm:$0xff]  ;;  %p491_p10 = scmp.ne.s32.totalorder %s312_s1, %s490_s21  ;;  %p496_p12 = scmp.lt.s32.totalorder %s490_s21, %s490_s21 }
  0x1f   :  { %365 = vmatpush3.msra.mxu0 %v39_v2  ;;  %372 = vmatpush3.msra.mxu1 %v135_v5  ;;  %v125_v15 = vld [vmem:[#allocation5 + $0x38] sm:$0xff]  ;;  %v124_v16 = vld [vmem:[#allocation5 + $0x30] sm:$0xff]  ;;  %v123_v17 = vld [vmem:[#allocation5 + $0x28] sm:$0xff] }
  0x20   :  { %367 = vmatmul.mubr.msk.f32.vlgmr.msra.gmra.mxu0 %vm46_vm1, %v38_v3  ;;  %373 = vmatprep.subr.mxu1 %v520_v0  ;;  %v122_v18 = vld [vmem:[#allocation5 + $0x20] sm:$0xff]  ;;  %v121_v19 = vld [vmem:[#allocation5 + $0x18] sm:$0xff]  ;;  %v227_v21 = vld [vmem:[#allocation5 + $0x110] sm:$0xff]  ;;  %p497_p13 = por %p496_p12, %p495_p11 }
  0x21   :  { %404 = vmatprep.subr.mxu0 %v520_v0  ;;  %374 = vmatpush3.msra.mxu1 %v134_v6  ;;  %v228_v20 = vld [vmem:[#allocation5 + $0x118] sm:$0xff]  ;;  %v226_v22 = vld [vmem:[#allocation5 + $0x108] sm:$0xff]  ;;  %v225_v23 = vld [vmem:[#allocation5 + $0x100] sm:$0xff] }
  0x22   :  { %436 = vmatprep.mubr.msk.f32.mxu0 %vm521_vm0, %v520_v0  ;;  %375 = vmatprep.subr.mxu1 %v520_v0  ;;  %v224_v24 = vld [vmem:[#allocation5 + $0xf8] sm:$0xff]  ;;  %v223_v25 = vld [vmem:[#allocation5 + $0xf0] sm:$0xff]  ;;  %v222_v26 = vld [vmem:[#allocation5 + $0xe8] sm:$0xff]  ;;  %p498_p0 = pnand %p497_p13, %p491_p10 }
  0x23   :  { %376 = vmatpush3.msra.mxu1 %v133_v7  ;;  %405 = vmatpush3.msra.mxu0 %v228_v20  ;;  %v321_v27 = vld [vmem:[#allocation5 + $0x10] ss:$0 sm:$0xff]  ;;  %v221_v32 = vld [vmem:[#allocation5 + $0xe0] sm:$0xff]  ;;  %v220_v33 = vld [vmem:[#allocation5 + $0xd8] sm:$0xff] }
  0x24   :  { %377 = vmatprep.subr.mxu1 %v520_v0  ;;  %406 = vmatprep.subr.mxu0 %v520_v0  ;;  %v219_v34 = vld [vmem:[#allocation5 + $0xd0] sm:$0xff]  ;;  %v218_v35 = vld [vmem:[#allocation5 + $0xc8] sm:$0xff]  ;;  %v217_v36 = vld [vmem:[#allocation5 + $0xc0] sm:$0xff] }
  0x25   :  { %378 = vmatpush3.msra.mxu1 %v132_v8  ;;  %407 = vmatpush3.msra.mxu0 %v227_v21  ;;  %v216_v37 = vld [vmem:[#allocation5 + $0xb8] sm:$0xff]  ;;  %v215_v38 = vld [vmem:[#allocation5 + $0xb0] sm:$0xff]  ;;  %v214_v39 = vld [vmem:[#allocation5 + $0xa8] sm:$0xff] }
  0x26   :  { %379 = vmatprep.subr.mxu1 %v520_v0  ;;  %408 = vmatprep.subr.mxu0 %v520_v0  ;;  %v213_v40 = vld [vmem:[#allocation5 + $0xa0] sm:$0xff]  ;;  %v323_v41 = vld [vmem:[#allocation5 + $0x98] ss:$0 sm:$0xff] }
  0x27   :  { %380 = vmatpush3.msra.mxu1 %v131_v9  ;;  %409 = vmatpush3.msra.mxu0 %v226_v22  ;;  %v324_v46 = vld [vmem:[#allocation5 + $0x120] ss:$0 sm:$0xff] }
  0x28   :  { %381 = vmatprep.subr.mxu1 %v520_v0  ;;  %410 = vmatprep.subr.mxu0 %v520_v0 }
  0x29   :  { %382 = vmatpush3.msra.mxu1 %v130_v10  ;;  %411 = vmatpush3.msra.mxu0 %v225_v23 }
  0x2a   :  { %383 = vmatprep.subr.mxu1 %v520_v0  ;;  %412 = vmatprep.subr.mxu0 %v520_v0 }
  0x2b   :  { %384 = vmatpush3.msra.mxu1 %v129_v11  ;;  %413 = vmatpush3.msra.mxu0 %v224_v24 }
  0x2c   :  { %385 = vmatprep.subr.mxu1 %v520_v0  ;;  %414 = vmatprep.subr.mxu0 %v520_v0 }
  0x2d   :  { %386 = vmatpush3.msra.mxu1 %v128_v12  ;;  %415 = vmatpush3.msra.mxu0 %v223_v25 }
  0x2e   :  { %387 = vmatprep.subr.mxu1 %v520_v0  ;;  %416 = vmatprep.subr.mxu0 %v520_v0 }
  0x2f   :  { %388 = vmatpush3.msra.mxu1 %v127_v13  ;;  %417 = vmatpush3.msra.mxu0 %v222_v26 }
  0x30   :  { %389 = vmatprep.subr.mxu1 %v520_v0  ;;  %418 = vmatprep.subr.mxu0 %v520_v0 }
  0x31   :  { %390 = vmatpush3.msra.mxu1 %v126_v14  ;;  %419 = vmatpush3.msra.mxu0 %v221_v32 }
  0x32   :  { %391 = vmatprep.subr.mxu1 %v520_v0  ;;  %420 = vmatprep.subr.mxu0 %v520_v0 }
  0x33   :  { %392 = vmatpush3.msra.mxu1 %v125_v15  ;;  %421 = vmatpush3.msra.mxu0 %v220_v33 }
  0x34   :  { %393 = vmatprep.subr.mxu1 %v520_v0  ;;  %422 = vmatprep.subr.mxu0 %v520_v0 }
  0x35   :  { %394 = vmatpush3.msra.mxu1 %v124_v16  ;;  %423 = vmatpush3.msra.mxu0 %v219_v34 }
  0x36   :  { %395 = vmatprep.subr.mxu1 %v520_v0  ;;  %424 = vmatprep.subr.mxu0 %v520_v0 }
  0x37   :  { %396 = vmatpush3.msra.mxu1 %v123_v17  ;;  %425 = vmatpush3.msra.mxu0 %v218_v35 }
  0x38   :  { %397 = vmatprep.subr.mxu1 %v520_v0  ;;  %426 = vmatprep.subr.mxu0 %v520_v0 }
  0x39   :  { %398 = vmatpush3.msra.mxu1 %v122_v18  ;;  %427 = vmatpush3.msra.mxu0 %v217_v36 }
  0x3a   :  { %399 = vmatprep.subr.mxu1 %v520_v0  ;;  %428 = vmatprep.subr.mxu0 %v520_v0 }
  0x3b   :  { %400 = vmatpush3.msra.mxu1 %v121_v19  ;;  %429 = vmatpush3.msra.mxu0 %v216_v37 }
  0x3c   :  { %430 = vmatprep.subr.mxu0 %v520_v0 }
  0x3d   :  { %431 = vmatpush3.msra.mxu0 %v215_v38 }
  0x3e   :  { %432 = vmatprep.subr.mxu0 %v520_v0 }
  0x3f   :  { %433 = vmatpush3.msra.mxu0 %v214_v39 }
  0x40   :  { %434 = vmatprep.subr.mxu0 %v520_v0 }
  0x41   :  { %435 = vmatpush3.msra.mxu0 %v213_v40 }
  0xe0   :  { %v116_v28 = vpop.f32.mrf.mxu0 }
  0xe1   :  { %v117_v29 = vadd.f32 %v321_v27, %v116_v28 }
  0xe2   :  { %v368_v30 = vpop.f32.mrf.mxu0 }
  0xe3   :  { %446 = vtanh.f32 %v117_v29 }
  0xf0   :  { %v447_v31 = vpop.eup %446 }
  0xf1   :  { %402 = vmatmul.mubr.f32.vlgmr.msra.gmra.mxu1 %v447_v31 }
 0x1b1   :  { %v208_v42 = vpop.f32.mrf.mxu1 }
 0x1b2   :  { %v209_v43 = vadd.f32 %v323_v41, %v208_v42 }
 0x1b3   :  { %v403_v44 = vpop.f32.mrf.mxu1 }
 0x1b4   :  { %448 = vtanh.f32 %v209_v43 }
 0x1c1   :  { %v449_v45 = vpop.eup %448 }
 0x1c2   :  { %437 = vmatmul.mubr.f32.vlgmr.msra.gmra.mxu0 %v449_v45 }
 0x282   :  { %v300_v47 = vpop.f32.mrf.mxu0 }
 0x283   :  { %v301_v48 = vadd.f32 %v324_v46, %v300_v47 }
 0x284   :  { %v438_v49 = vpop.f32.mrf.mxu0 }
 0x285   :  { %304 = vst [vmem:[#allocation7] sm:$0xff] %v301_v48 }
 0x286   :  { %501 = shalt.err (!%p498_p0)
}
 0x287   :  { %314 = dma.vmem_to_hbm [thread:$0]  %s312_s1, 128, %s589_s2, [#allocation4]  }
 0x288   :  { %514 = dma.done.wait [#allocation4], 128  }
 0x289   :  { %515 = vsyncadd [#allocation4], 4294967168 }
 0x28a   :  { %318 = vsyncpa [#allocation3], 1 }
 0x28b   :  { %319 = vsyncpa [#allocation6], 1 }
 0x28c   :  { %320 = vsyncpa [#allocation4], 1 }

</bundles_post_ra>
